<compile_context>
chip_gen: v7x
topology: tpu7x:2x2x1
jax: 0.10.0
libtpu: 0.0.40
codegen_flags: <defaults>
</compile_context>

<pallas_src>
import math

import jax
import jax.numpy as jnp
from jax.experimental import pallas as pl
from jax.experimental.pallas import tpu as pltpu


def _mha_kernel(q_ref, k_ref, v_ref, wq_ref, wk_ref, wv_ref, wo_ref,
                out_ref, attn_ref):
    # Per-(batch, head) tile:
    #   q/k/v_ref : (1, S, D)  bf16
    #   wq/wk/wv  : (1, D, dh) bf16   (scale folded into wq)
    #   wo_ref    : (1, dh, D) bf16
    #   out_ref   : (1, S, D)  f32    (accumulated across the head grid axis)
    #   attn_ref  : (1, 1, S, S) f32
    h = pl.program_id(1)

    q_in = q_ref[0]                       # (S, D) bf16
    k_in = k_ref[0]
    v_in = v_ref[0]

    # Per-head input projections (MXU, bf16 in / f32 acc).
    q = jnp.dot(q_in, wq_ref[0], preferred_element_type=jnp.float32)   # (S, dh)
    k = jnp.dot(k_in, wk_ref[0], preferred_element_type=jnp.float32)
    v = jnp.dot(v_in, wv_ref[0], preferred_element_type=jnp.float32)

    # QK^T (scale already folded into wq).
    scores = jnp.dot(q.astype(jnp.bfloat16),
                     k.astype(jnp.bfloat16).T,
                     preferred_element_type=jnp.float32)               # (S, S) f32

    # Softmax along the key axis, in f32; normalization via EUP approx recip.
    m = jnp.max(scores, axis=-1, keepdims=True)
    e = jnp.exp(scores - m)
    denom = jnp.sum(e, axis=-1, keepdims=True)
    p = e * pl.reciprocal(denom, approx=True)                          # (S, S) f32

    attn_ref[0, 0] = p

    # PV and per-head slice of the output projection.
    ctx = jnp.dot(p.astype(jnp.bfloat16),
                  v.astype(jnp.bfloat16),
                  preferred_element_type=jnp.float32)                  # (S, dh)
    partial = jnp.dot(ctx.astype(jnp.bfloat16), wo_ref[0],
                      preferred_element_type=jnp.float32)              # (S, D)

    # Accumulate output projection across heads (out block is resident over h).
    @pl.when(h == 0)
    def _():
        out_ref[...] = jnp.zeros_like(out_ref)

    out_ref[0] = out_ref[0] + partial


def multihead_attention(query, key, value, wq, wk, wv, wo, nheads):
    """query/key/value: [B, S, D]; w*: [D, D] pre-transposed so y = x @ w."""
    B, S, D = query.shape
    assert D % nheads == 0
    d_head = D // nheads
    scale = 1.0 / math.sqrt(d_head)

    # Weight prep (wrapper-side layout plumbing, done once):
    #   head-major + bf16; the 1/sqrt(d_head) scale is folded into wq.
    def head_major_in(w, s=1.0):
        return (w * s).reshape(D, nheads, d_head).transpose(1, 0, 2).astype(jnp.bfloat16)

    wq_hm = head_major_in(wq, scale)                       # (H, D, dh)
    wk_hm = head_major_in(wk)
    wv_hm = head_major_in(wv)
    wo_hm = wo.reshape(nheads, d_head, D).astype(jnp.bfloat16)   # (H, dh, D)

    # bf16 activations: halves HBM/VMEM DMA bytes, native MXU dtype.
    q_bf = query.astype(jnp.bfloat16)
    k_bf = key.astype(jnp.bfloat16)
    v_bf = value.astype(jnp.bfloat16)

    qkv_spec = pl.BlockSpec((1, S, D), lambda b, h: (b, 0, 0))
    w_in_spec = pl.BlockSpec((1, D, d_head), lambda b, h: (h, 0, 0))
    w_out_spec = pl.BlockSpec((1, d_head, D), lambda b, h: (h, 0, 0))

    out_shape = (
        jax.ShapeDtypeStruct((B, S, D), jnp.float32),
        jax.ShapeDtypeStruct((B, nheads, S, S), jnp.float32),
    )

    return pl.pallas_call(
        _mha_kernel,
        out_shape=out_shape,
        grid_spec=pltpu.PrefetchScalarGridSpec(
            num_scalar_prefetch=0,
            grid=(B, nheads),
            in_specs=[qkv_spec, qkv_spec, qkv_spec,
                      w_in_spec, w_in_spec, w_in_spec, w_out_spec],
            out_specs=[
                pl.BlockSpec((1, S, D), lambda b, h: (b, 0, 0)),       # accumulated over h
                pl.BlockSpec((1, 1, S, S), lambda b, h: (b, h, 0, 0)),
            ],
        ),
        compiler_params=pltpu.CompilerParams(
            # Head axis accumulates into the output block -> must be "arbitrary";
            # batch axis is "parallel" for megacore sharding.
            dimension_semantics=("parallel", "arbitrary"),
        ),
    )(q_bf, k_bf, v_bf, wq_hm, wk_hm, wv_hm, wo_hm)


def _reference(query, key, value, wq, wk, wv, wo, nheads):
    """Pure-JAX f32 reference matching the PyTorch module forward."""
    B, S, D = query.shape
    d_head = D // nheads

    def split(x):
        return x.reshape(B, S, nheads, d_head).transpose(0, 2, 1, 3)   # (B,H,S,dh)

    q = split(query @ wq)
    k = split(key @ wk)
    v = split(value @ wv)
    scores = jnp.einsum("bhqd,bhkd->bhqk", q, k) / math.sqrt(d_head)
    p = jax.nn.softmax(scores, axis=-1)
    x = jnp.einsum("bhqk,bhkd->bhqd", p, v)
    x = x.transpose(0, 2, 1, 3).reshape(B, S, D)                       # combine heads
    return x @ wo, p


if __name__ == "__main__":
    B, S, D, H = 2, 8, 32, 4

    key0 = jax.random.PRNGKey(0)
    ks = jax.random.split(key0, 7)
    # Xavier-uniform-style deterministic init for the 4 bias-free Linear layers.
    limit = math.sqrt(6.0 / (D + D))
    wq = jax.random.uniform(ks[0], (D, D), jnp.float32, -limit, limit)
    wk = jax.random.uniform(ks[1], (D, D), jnp.float32, -limit, limit)
    wv = jax.random.uniform(ks[2], (D, D), jnp.float32, -limit, limit)
    wo = jax.random.uniform(ks[3], (D, D), jnp.float32, -limit, limit)

    query = jax.random.normal(ks[4], (B, S, D), jnp.float32)
    keyx = jax.random.normal(ks[5], (B, S, D), jnp.float32)
    value = jax.random.normal(ks[6], (B, S, D), jnp.float32)

    out, attn = multihead_attention(query, keyx, value, wq, wk, wv, wo, H)
    jax.block_until_ready(out)
    jax.block_until_ready(attn)

    ref_out, ref_attn = _reference(query, keyx, value, wq, wk, wv, wo, H)
    # bf16 MXU inputs (f32 accumulation / f32 softmax) -> loosened tolerances.
    assert jnp.allclose(out, ref_out, atol=5e-2, rtol=5e-2), (
        float(jnp.max(jnp.abs(out - ref_out))))
    assert jnp.allclose(attn, ref_attn, atol=5e-2, rtol=5e-2), (
        float(jnp.max(jnp.abs(attn - ref_attn))))

    print("KERNEL_OK")
</pallas_src>

<mosaic_0001>
module attributes {stable_mosaic.version = 11 : i64} {
  func.func @_mha_kernel(%arg0: i32, %arg1: i32, %arg2: memref<1x8x32xbf16, #tpu.memory_space<vmem>>, %arg3: memref<1x8x32xbf16, #tpu.memory_space<vmem>>, %arg4: memref<1x8x32xbf16, #tpu.memory_space<vmem>>, %arg5: memref<1x32x8xbf16, #tpu.memory_space<vmem>>, %arg6: memref<1x32x8xbf16, #tpu.memory_space<vmem>>, %arg7: memref<1x32x8xbf16, #tpu.memory_space<vmem>>, %arg8: memref<1x8x32xbf16, #tpu.memory_space<vmem>>, %arg9: memref<1x8x32xf32, #tpu.memory_space<vmem>>, %arg10: memref<1x1x8x8xf32, #tpu.memory_space<vmem>>) attributes {dimension_semantics = [#tpu.dimension_semantics<parallel>, #tpu.dimension_semantics<arbitrary>], iteration_bounds = array<i64: 2, 4>, scalar_prefetch = 0 : i64, scratch_operands = 0 : i64, tpu.core_type = #tpu.core_type<tc>, window_params = [{transform_indices = @transform_0, window_bounds = array<i64: 1, 8, 32>}, {transform_indices = @transform_1, window_bounds = array<i64: 1, 8, 32>}, {transform_indices = @transform_2, window_bounds = array<i64: 1, 8, 32>}, {transform_indices = @transform_3, window_bounds = array<i64: 1, 32, 8>}, {transform_indices = @transform_4, window_bounds = array<i64: 1, 32, 8>}, {transform_indices = @transform_5, window_bounds = array<i64: 1, 32, 8>}, {transform_indices = @transform_6, window_bounds = array<i64: 1, 8, 32>}, {transform_indices = @transform_7, window_bounds = array<i64: 1, 8, 32>}, {transform_indices = @transform_8, window_bounds = array<i64: 1, 1, 8, 8>}]} {
    %c0 = arith.constant 0 : index
    %c0_0 = arith.constant 0 : index
    %c0_1 = arith.constant 0 : index
    %0 = vector.load %arg2[%c0, %c0_0, %c0_1] : memref<1x8x32xbf16, #tpu.memory_space<vmem>>, vector<1x8x32xbf16>
    %1 = vector.shape_cast %0 : vector<1x8x32xbf16> to vector<8x32xbf16>
    %c0_2 = arith.constant 0 : index
    %c0_3 = arith.constant 0 : index
    %c0_4 = arith.constant 0 : index
    %2 = vector.load %arg3[%c0_2, %c0_3, %c0_4] : memref<1x8x32xbf16, #tpu.memory_space<vmem>>, vector<1x8x32xbf16>
    %3 = vector.shape_cast %2 : vector<1x8x32xbf16> to vector<8x32xbf16>
    %c0_5 = arith.constant 0 : index
    %c0_6 = arith.constant 0 : index
    %c0_7 = arith.constant 0 : index
    %4 = vector.load %arg4[%c0_5, %c0_6, %c0_7] : memref<1x8x32xbf16, #tpu.memory_space<vmem>>, vector<1x8x32xbf16>
    %5 = vector.shape_cast %4 : vector<1x8x32xbf16> to vector<8x32xbf16>
    %c0_8 = arith.constant 0 : index
    %c0_9 = arith.constant 0 : index
    %c0_10 = arith.constant 0 : index
    %6 = vector.load %arg5[%c0_8, %c0_9, %c0_10] : memref<1x32x8xbf16, #tpu.memory_space<vmem>>, vector<1x32x8xbf16>
    %7 = vector.shape_cast %6 : vector<1x32x8xbf16> to vector<32x8xbf16>
    %cst = arith.constant dense<0.000000e+00> : vector<8x8xf32>
    %8 = tpu.matmul %1, %7, %cst {dimension_numbers = #tpu.dot_dimension_numbers<[1], [0], [0], [1], [0, 0, 1, 1], [], []>} : vector<8x32xbf16>, vector<32x8xbf16>, vector<8x8xf32> -> vector<8x8xf32>
    %c0_11 = arith.constant 0 : index
    %c0_12 = arith.constant 0 : index
    %c0_13 = arith.constant 0 : index
    %9 = vector.load %arg6[%c0_11, %c0_12, %c0_13] : memref<1x32x8xbf16, #tpu.memory_space<vmem>>, vector<1x32x8xbf16>
    %10 = vector.shape_cast %9 : vector<1x32x8xbf16> to vector<32x8xbf16>
    %cst_14 = arith.constant dense<0.000000e+00> : vector<8x8xf32>
    %11 = tpu.matmul %3, %10, %cst_14 {dimension_numbers = #tpu.dot_dimension_numbers<[1], [0], [0], [1], [0, 0, 1, 1], [], []>} : vector<8x32xbf16>, vector<32x8xbf16>, vector<8x8xf32> -> vector<8x8xf32>
    %c0_15 = arith.constant 0 : index
    %c0_16 = arith.constant 0 : index
    %c0_17 = arith.constant 0 : index
    %12 = vector.load %arg7[%c0_15, %c0_16, %c0_17] : memref<1x32x8xbf16, #tpu.memory_space<vmem>>, vector<1x32x8xbf16>
    %13 = vector.shape_cast %12 : vector<1x32x8xbf16> to vector<32x8xbf16>
    %cst_18 = arith.constant dense<0.000000e+00> : vector<8x8xf32>
    %14 = tpu.matmul %5, %13, %cst_18 {dimension_numbers = #tpu.dot_dimension_numbers<[1], [0], [0], [1], [0, 0, 1, 1], [], []>} : vector<8x32xbf16>, vector<32x8xbf16>, vector<8x8xf32> -> vector<8x8xf32>
    %15 = arith.truncf %8 : vector<8x8xf32> to vector<8x8xbf16>
    %16 = arith.truncf %11 : vector<8x8xf32> to vector<8x8xbf16>
    %17 = tpu.transpose %16, [1, 0] : vector<8x8xbf16> -> vector<8x8xbf16>
    %cst_19 = arith.constant dense<0.000000e+00> : vector<8x8xf32>
    %18 = tpu.matmul %15, %17, %cst_19 {dimension_numbers = #tpu.dot_dimension_numbers<[1], [0], [0], [1], [0, 0, 1, 1], [], []>} : vector<8x8xbf16>, vector<8x8xbf16>, vector<8x8xf32> -> vector<8x8xf32>
    %cst_20 = arith.constant dense<0xFF800000> : vector<8xf32>
    %19 = vector.multi_reduction <maximumf>, %18, %cst_20 [1] : vector<8x8xf32> to vector<8xf32>
    %20 = vector.shape_cast %19 : vector<8xf32> to vector<8x1xf32>
    %21 = vector.broadcast %20 : vector<8x1xf32> to vector<8x8xf32>
    %22 = arith.subf %18, %21 : vector<8x8xf32>
    %23 = math.exp %22 : vector<8x8xf32>
    %cst_21 = arith.constant dense<0.000000e+00> : vector<8xf32>
    %24 = vector.multi_reduction <add>, %23, %cst_21 [1] : vector<8x8xf32> to vector<8xf32>
    %25 = vector.shape_cast %24 : vector<8xf32> to vector<8x1xf32>
    %26 = tpu.reciprocal %25 {approx = true} : vector<8x1xf32> -> vector<8x1xf32>
    %27 = vector.broadcast %26 : vector<8x1xf32> to vector<8x8xf32>
    %28 = arith.mulf %23, %27 : vector<8x8xf32>
    %c0_22 = arith.constant 0 : index
    %c0_23 = arith.constant 0 : index
    %c0_24 = arith.constant 0 : index
    %c0_25 = arith.constant 0 : index
    %29 = vector.load %arg10[%c0_22, %c0_23, %c0_24, %c0_25] : memref<1x1x8x8xf32, #tpu.memory_space<vmem>>, vector<1x1x8x8xf32>
    %30 = vector.shape_cast %29 : vector<1x1x8x8xf32> to vector<8x8xf32>
    %31 = vector.shape_cast %28 : vector<8x8xf32> to vector<1x1x8x8xf32>
    tpu.vector_store %arg10[%c0_22, %c0_23, %c0_24, %c0_25], %31 {strides = array<i32>} : memref<1x1x8x8xf32, #tpu.memory_space<vmem>>, vector<1x1x8x8xf32>,
    %32 = arith.truncf %28 : vector<8x8xf32> to vector<8x8xbf16>
    %33 = arith.truncf %14 : vector<8x8xf32> to vector<8x8xbf16>
    %cst_26 = arith.constant dense<0.000000e+00> : vector<8x8xf32>
    %34 = tpu.matmul %32, %33, %cst_26 {dimension_numbers = #tpu.dot_dimension_numbers<[1], [0], [0], [1], [0, 0, 1, 1], [], []>} : vector<8x8xbf16>, vector<8x8xbf16>, vector<8x8xf32> -> vector<8x8xf32>
    %35 = arith.truncf %34 : vector<8x8xf32> to vector<8x8xbf16>
    %c0_27 = arith.constant 0 : index
    %c0_28 = arith.constant 0 : index
    %c0_29 = arith.constant 0 : index
    %36 = vector.load %arg8[%c0_27, %c0_28, %c0_29] : memref<1x8x32xbf16, #tpu.memory_space<vmem>>, vector<1x8x32xbf16>
    %37 = vector.shape_cast %36 : vector<1x8x32xbf16> to vector<8x32xbf16>
    %cst_30 = arith.constant dense<0.000000e+00> : vector<8x32xf32>
    %38 = tpu.matmul %35, %37, %cst_30 {dimension_numbers = #tpu.dot_dimension_numbers<[1], [0], [0], [1], [0, 0, 1, 1], [], []>} : vector<8x8xbf16>, vector<8x32xbf16>, vector<8x32xf32> -> vector<8x32xf32>
    %c0_i32 = arith.constant 0 : i32
    %39 = arith.cmpi eq, %arg1, %c0_i32 : i32
    %40 = arith.extui %39 : i1 to i32
    %c0_i32_31 = arith.constant 0 : i32
    %41 = arith.cmpi ne, %40, %c0_i32_31 : i32
    scf.if %41 {
      %cst_38 = arith.constant 0.000000e+00 : f32
      %48 = vector.broadcast %cst_38 : f32 to vector<1x8x32xf32>
      %c0_39 = arith.constant 0 : index
      %c0_40 = arith.constant 0 : index
      %c0_41 = arith.constant 0 : index
      %49 = vector.load %arg9[%c0_39, %c0_40, %c0_41] : memref<1x8x32xf32, #tpu.memory_space<vmem>>, vector<1x8x32xf32>
      tpu.vector_store %arg9[%c0_39, %c0_40, %c0_41], %48 {strides = array<i32>} : memref<1x8x32xf32, #tpu.memory_space<vmem>>, vector<1x8x32xf32>,
    } else {
    }
    %c0_32 = arith.constant 0 : index
    %c0_33 = arith.constant 0 : index
    %c0_34 = arith.constant 0 : index
    %42 = vector.load %arg9[%c0_32, %c0_33, %c0_34] : memref<1x8x32xf32, #tpu.memory_space<vmem>>, vector<1x8x32xf32>
    %43 = vector.shape_cast %42 : vector<1x8x32xf32> to vector<8x32xf32>
    %44 = arith.addf %43, %38 : vector<8x32xf32>
    %c0_35 = arith.constant 0 : index
    %c0_36 = arith.constant 0 : index
    %c0_37 = arith.constant 0 : index
    %45 = vector.load %arg9[%c0_35, %c0_36, %c0_37] : memref<1x8x32xf32, #tpu.memory_space<vmem>>, vector<1x8x32xf32>
    %46 = vector.shape_cast %45 : vector<1x8x32xf32> to vector<8x32xf32>
    %47 = vector.shape_cast %44 : vector<8x32xf32> to vector<1x8x32xf32>
    tpu.vector_store %arg9[%c0_35, %c0_36, %c0_37], %47 {strides = array<i32>} : memref<1x8x32xf32, #tpu.memory_space<vmem>>, vector<1x8x32xf32>,
    return
  }
  func.func @transform_0(%arg0: i32, %arg1: i32) -> (i32, i32, i32) {
    %c0_i32 = arith.constant 0 : i32
    %c0_i32_0 = arith.constant 0 : i32
    %c0_i32_1 = arith.constant 0 : i32
    return %arg0, %c0_i32, %c0_i32_0 : i32, i32, i32
  }
  func.func @transform_1(%arg0: i32, %arg1: i32) -> (i32, i32, i32) {
    %c0_i32 = arith.constant 0 : i32
    %c0_i32_0 = arith.constant 0 : i32
    %c0_i32_1 = arith.constant 0 : i32
    return %arg0, %c0_i32, %c0_i32_0 : i32, i32, i32
  }
  func.func @transform_2(%arg0: i32, %arg1: i32) -> (i32, i32, i32) {
    %c0_i32 = arith.constant 0 : i32
    %c0_i32_0 = arith.constant 0 : i32
    %c0_i32_1 = arith.constant 0 : i32
    return %arg0, %c0_i32, %c0_i32_0 : i32, i32, i32
  }
  func.func @transform_3(%arg0: i32, %arg1: i32) -> (i32, i32, i32) {
    %c0_i32 = arith.constant 0 : i32
    %c0_i32_0 = arith.constant 0 : i32
    %c0_i32_1 = arith.constant 0 : i32
    return %arg1, %c0_i32, %c0_i32_0 : i32, i32, i32
  }
  func.func @transform_4(%arg0: i32, %arg1: i32) -> (i32, i32, i32) {
    %c0_i32 = arith.constant 0 : i32
    %c0_i32_0 = arith.constant 0 : i32
    %c0_i32_1 = arith.constant 0 : i32
    return %arg1, %c0_i32, %c0_i32_0 : i32, i32, i32
  }
  func.func @transform_5(%arg0: i32, %arg1: i32) -> (i32, i32, i32) {
    %c0_i32 = arith.constant 0 : i32
    %c0_i32_0 = arith.constant 0 : i32
    %c0_i32_1 = arith.constant 0 : i32
    return %arg1, %c0_i32, %c0_i32_0 : i32, i32, i32
  }
  func.func @transform_6(%arg0: i32, %arg1: i32) -> (i32, i32, i32) {
    %c0_i32 = arith.constant 0 : i32
    %c0_i32_0 = arith.constant 0 : i32
    %c0_i32_1 = arith.constant 0 : i32
    return %arg1, %c0_i32, %c0_i32_0 : i32, i32, i32
  }
  func.func @transform_7(%arg0: i32, %arg1: i32) -> (i32, i32, i32) {
    %c0_i32 = arith.constant 0 : i32
    %c0_i32_0 = arith.constant 0 : i32
    %c0_i32_1 = arith.constant 0 : i32
    return %arg0, %c0_i32, %c0_i32_0 : i32, i32, i32
  }
  func.func @transform_8(%arg0: i32, %arg1: i32) -> (i32, i32, i32, i32) {
    %c0_i32 = arith.constant 0 : i32
    %c0_i32_0 = arith.constant 0 : i32
    %c0_i32_1 = arith.constant 0 : i32
    return %arg0, %arg1, %c0_i32, %c0_i32_0 : i32, i32, i32, i32
  }
}

</mosaic_0001>

<bundles_post_ra>
// kernel: tpu_custom_call.1
= control target key start
LH: loop header
LB: loop body
LE: loop exit
PB: predicated region body
PF: predicated region fallthrough
CT: control target
= control target key end

     0   :  { %s1695_s0 = inlined_call_operand.vmem [shape: bf16[2,8,32], index: 0, kind: input, shape index: {}]   ;;  %s1696_s1 = inlined_call_operand.vmem [shape: bf16[2,8,32], index: 1, kind: input, shape index: {}]   ;;  %s1697_s2 = inlined_call_operand.vmem [shape: bf16[2,8,32], index: 2, kind: input, shape index: {}]   ;;  %s1698_s3 = inlined_call_operand.vmem [shape: bf16[4,32,8], index: 3, kind: input, shape index: {}]   ;;  %s1699_s4 = inlined_call_operand.vmem [shape: bf16[4,32,8], index: 4, kind: input, shape index: {}]   ;;  %s1700_s5 = inlined_call_operand.vmem [shape: bf16[4,32,8], index: 5, kind: input, shape index: {}]   ;;  %s1701_s6 = inlined_call_operand.vmem [shape: bf16[4,8,32], index: 6, kind: input, shape index: {}]   ;;  %s1702_s7 = inlined_call_operand.hbm [shape: f32[2,8,32], index: 7, kind: output, shape index: {0}]   ;;  %s1703_s8 = inlined_call_operand.hbm [shape: f32[2,4,8,8], index: 8, kind: output, shape index: {1}]  }
   0x1   :  { %1714 = sst [smem:[#allocation18_spill]] %s1698_s3 }
   0x2   :  { %1715 = sst [smem:[#allocation19_spill]] %s1703_s8 }
   0x3   :  { %14 = vsyncpa [#allocation3], 0 }
   0x4   :  { %16 = vsyncpa [#allocation3 + $0x1], 0 }
   0x5   :  { %17 = vsyncpa [#allocation5], 0 }
   0x6   :  { %19 = vsyncpa [#allocation5 + $0x1], 0  ;;  %s1407_s27 = smov 0   ;;  %s1409_s28 = smov 0  }
   0x7   :  { %s1411_s29 = smov 0   ;;  %s1413_s30 = smov 0  }
   0x8   :  { %s1415_s9 = smov 0   ;;  %s1417_s10 = smov 0  }
   0x9   :  { %s1419_s11 = smov 0   ;;  %s1421_s12 = smov 0  }
   0xa   :  { %s1423_s13 = smov 0   ;;  %s1425_s14 = smov 0  }
   0xb   :  { %s1427_s15 = smov 0  }
   0xc LB: > { %1716 = sst [smem:[#allocation8_spill]] %s1323_s29  ;;  %s995_s16 = sadd.s32 4294967295, %s1355_s15   ;;  %s1355_s15 = sphi %s1427_s15, %s25_s15   ;;  %s1351_s14 = sphi %s1425_s14, %s1745_s14   ;;  %s1347_s13 = sphi %s1423_s13, %s1744_s13   ;;  %s1343_s12 = sphi %s1421_s12, %s1743_s12   ;;  %s1339_s11 = sphi %s1419_s11, %s1742_s11   ;;  %s1335_s10 = sphi %s1417_s10, %s1741_s10   ;;  %s1331_s9 = sphi %s1415_s9, %s1749_s9   ;;  %s1327_s30 = sphi %s1413_s30, %s1748_s30   ;;  %s1323_s29 = sphi %s1411_s29, %s1739_s29   ;;  %s1319_s28 = sphi %s1409_s28, %s1747_s28   ;;  %s1315_s27 = sphi %s1407_s27, %s1746_s27  }
   0xd   : > { %1717 = sst [smem:[#allocation9_spill]] %s1327_s30  ;;  %s996_s17 = sadd.s32 4294967294, %s1355_s15  }
   0xe   : > { %1718 = sst [smem:[#allocation10_spill]] %s1335_s10  ;;  %s34_s18 = sadd.s32 1, %s1347_s13 }
   0xf   : > { %1719 = sst [smem:[#allocation11_spill]] %s1347_s13  ;;  %s37_s19 = sadd.s32 1, %s1351_s14 }
  0x10   : > { %1720 = sst [smem:[#allocation12_spill]] %s1351_s14  ;;  %p35_p0 = scmp.ge.s32.totalorder %s34_s18, 4 }
  0x11   : > { %s226_s20 = sadd.s32 1, %s1335_s10  ;;  %p236_p1 = scmp.ne.s32.totalorder %s1335_s10, %s1331_s9 }
  0x12   : > { %p1469_p2 = scmp.eq.s32.totalorder %s995_s16, 7  ;;  %s1751_s18 = smov (%p35_p0, %s34_s18), 0 }
  0x13   : > { %1722 = sst [smem:[#allocation13_spill]] %s1751_s18  ;;  %s1753_s19 = smov (!%p35_p0, %s37_s19), %s1351_s14 }
  0x14   : > { %p1478_p3 = por %p1469_p2, %p236_p1  ;;  %p242_p4 = scmp.ne.s32.totalorder %s1331_s9, %s1327_s30 }
  0x15   : > { %p39_p5 = scmp.ge.s32.totalorder %s1753_s19, 2  ;;  %p1484_p6 = scmp.eq.s32.totalorder %s996_s17, 7 }
  0x16   : > { %s250_s24 = ssub.s32 %s1347_s13, %s1751_s18  ;;  %s254_s25 = sadd.s32 1, %s1323_s29 }
  0x17   : > { %s1755_s19 = smov (%p39_p5, %s1753_s19), 0  ;;  %p1495_p7 = por %p1484_p6, %p242_p4 }
  0x18   : > { %1725 = sst [smem:[#allocation14_spill]] %s1755_s19  ;;  %p264_p8 = scmp.ne.s32.totalorder %s1323_s29, %s1319_s28 }
  0x19   : > { %s223_s16 = ssub.s32 %s1351_s14, %s1755_s19  ;;  %p270_p9 = scmp.ne.s32.totalorder %s1319_s28, %s1315_s27 }
  0x1a   : > { %p224_p10 = scmp.eq.s32.totalorder %s223_s16, 0  ;;  %s251_s17 = sor.u32 %s250_s24, %s223_s16 }
  0x1b   : > { %p252_p11 = scmp.eq.s32.totalorder %s251_s17, 0  ;;  %p1507_p12 = por %p264_p8, %p1469_p2 }
  0x1c   : > { %s1512_s18 = scalar_select %p224_p10, %s1335_s10, %s226_s20  }
  0x1d   : > { %s1515_s13 = scalar_select %p252_p11, %s1323_s29, %s254_s25  }
  0x1e   : > { %1728 = sst [smem:[#allocation15_spill]] %s1512_s18  ;;  %p1519_p13 = por %p270_p9, %p1484_p6 }
  0x1f   : > { %1729 = sst [smem:[#allocation16_spill]] %s1515_s13  ;;  %p999_p0 = scmp.ge.s32.totalorder %s1355_s15, 1 }
  0x20   : > { %s1730_s8 = scalar_select %p1519_p13, 1, 0 }
  0x21   : > { %p341_p1 = scmp.lt.s32.totalorder %s1355_s15, 9 }
  0x22   : > { %1731 = sst [smem:[#allocation17_spill]] %s1730_s8 }
  0x23   : > { %p342_p4 = pnand %p999_p0, %p341_p1 }
  0x24   : > { %p418_p2 = scmp.lt.s32.totalorder (!%p342_p4), %s1339_s11, 3  ;;  %s1710_s20 = sand.u32 (!%p342_p4), 1, %s1331_s9   ;;  %v1357_v0 = vmov (!%p342_p4), 0.0   ;;  %vm1358_vm0 = vmmov (!%p342_p4), 0   ;;  %vm457_vm1 = vcmask (!%p342_p4), 261120   ;;  %vm621_vm2 = vcmask (!%p342_p4), 64512  }
  0x25   : > { %345 = sbr.rel (%p342_p4) target bundleno = 1285 (0x505), region = 48  ;;  %1058 = vmatprep.subr.bf16.mxu1 (!%p342_p4), %v1357_v0  ;;  %s1529_s21 = sshll.u32 (!%p342_p4), %s1710_s20, 3  ;;  %1050 = vmatprep.subr.bf16.mxu0 (!%p342_p4), %v1357_v0  ;;  %vm685_vm3 = vcmask (!%p342_p4), 1043456  }
  0x26   : > { %1062 = vmatprep.mubr.msk.bf16.mxu1 (!%p342_p4), %vm1358_vm0, %v1357_v0  ;;  %1054 = vmatprep.mubr.msk.bf16.mxu0 (!%p342_p4), %vm1358_vm0, %v1357_v0  ;;  %p406_p5 = scmp.lt.s32.totalorder (!%p342_p4), %s1343_s12, 1  ;;  %s1732_s3 = sld [smem:[#allocation18_spill]] (!%p342_p4) }
  0x27   : > { %p1024_p6 = scmp.ne.s32.totalorder (!%p342_p4), %s1339_s11, 0 }
  0x2c   : > { %s1532_s23 = scalar_select %p418_p2, %s1339_s11, 3 }
  0x2d   : > { %s407_s18 = scalar_select %p406_p5, %s1343_s12, 1 }
  0x2e   : > { %s1032_s24 = sshll.u32 %s1532_s23, 4  ;;  %v1359_v52 = vmov (!%p1024_p6), 0.0  }
  0x2f   : > { %s427_s17 = scalar_lea.vmem %s1699_s4, %s1032_s24  ;;  %s422_s20 = scalar_lea.vmem %s1732_s3, %s1032_s24 }
  0x30   : > { %v1195_v1 = vld [vmem:[%s427_s17] sm:$0xff]   ;;  %v1196_v2 = vld [vmem:[%s427_s17 + $0x8] sm:$0xff]   ;;  %s1548_s29 = scalar_lea.vmem %s1700_s5, %s1032_s24  ;;  %s1550_s8 = sshll.u32 %s407_s18, 2 }
  0x31   : > { %1059 = vmatpush3.bf16.msra.mxu1 %v1195_v1  ;;  %v1197_v3 = vld [vmem:[%s422_s20] sm:$0xff]   ;;  %v1198_v4 = vld [vmem:[%s422_s20 + $0x8] sm:$0xff]   ;;  %s413_s14 = scalar_lea.vmem %s1696_s1, %s1550_s8  ;;  %s409_s3 = scalar_lea.vmem %s1695_s0, %s1550_s8 }
  0x32   : > { %1060 = vmatprep.subr.bf16.mxu1 %v1357_v0  ;;  %1051 = vmatpush3.bf16.msra.mxu0 %v1197_v3  ;;  %v439_v5 = vld [vmem:[%s413_s14] sm:$0xf]  ;;  %v1200_v19 = vld [vmem:[%s1548_s29 + $0x8] sm:$0xff]   ;;  %s417_s13 = scalar_lea.vmem %s1697_s2, %s1550_s8  ;;  %s1011_s8 = sshll.u32 %s1532_s23, 2 }
  0x33   : > { %1052 = vmatprep.subr.bf16.mxu0 %v1357_v0  ;;  %v438_v6 = vld [vmem:[%s409_s3] sm:$0xf]  ;;  %s436_s20 = scalar_lea.vmem %s1701_s6, %s1011_s8  ;;  %s403_s24 = sand.u32 1, %s1319_s28  }
  0x34   : > { %v1199_v18 = vld [vmem:[%s1548_s29] sm:$0xff]   ;;  %s1584_s25 = sshll.u32 %s403_s24, 3  ;;  %s398_s23 = scalar_lea.vmem [#allocation2], %s1529_s21 }
  0x35   : > { %1061 = vmatpush3.bf16.msra.mxu1 %v1196_v2  ;;  %v440_v20 = vld [vmem:[%s417_s13] sm:$0xf]  ;;  %s405_s16 = scalar_lea.vmem [#allocation4], %s1584_s25  ;;  %781 = vst.msk [vmem:[%s398_s23] sm:$0xff] (!%p1024_p6), %vm457_vm1, %v1359_v52 }
  0x36   : > { %1074 = vmatprep.subr.bf16.mxu1 %v1357_v0  ;;  %1053 = vmatpush3.bf16.msra.mxu0 %v1198_v4  ;;  %v730_v37 = vld [vmem:[%s436_s20] sm:$0xf] }
  0x37   : > { %1066 = vmatprep.subr.bf16.mxu0 %v1357_v0  ;;  %v735_v38 = vsel %vm685_vm3, %v730_v37, 0 }
  0x38   : > { %1063 = vmatmul.mubr.msk.bf16.vlgmr.msra.gmra.mrb[0].mxu1 %vm457_vm1, %v439_v5 }
  0x39   : > { %1076 = vmatprep.mubr.msk.bf16.mxu1 %vm1358_vm0, %v1357_v0  ;;  %1055 = vmatmul.mubr.msk.bf16.vlgmr.msra.gmra.mrb[0].mxu0 %vm457_vm1, %v438_v6 }
  0x3a   : > { %1070 = vmatprep.mubr.msk.bf16.mxu0 %vm1358_vm0, %v1357_v0  ;;  %1067 = vmatpush3.bf16.msra.mxu0 %v1199_v18 }
  0x3b   : > { %1068 = vmatprep.subr.bf16.mxu0 %v1357_v0 }
  0x3e   : > { %1069 = vmatpush3.bf16.msra.mxu0 %v1200_v19 }
  0x3f   : > { %1080 = vmatprep.subr.bf16.mxu0 %v1357_v0 }
  0x41   : > { %1071 = vmatmul.mubr.msk.bf16.vlgmr.msra.gmra.mrb[4].mxu0 %vm457_vm1, %v440_v20 }
  0x42   : > { %1082 = vmatprep.mubr.msk.bf16.mxu0 %vm1358_vm0, %v1357_v0 }
 0x10b   : > { %v554_v7 = vpop.f32.mrb[0].mxu1 }
 0x10c   : > { %v620_v8 = vpack.c.bf16 %v554_v7, %v554_v7  ;;  %v1064_v9 = vpop.f32.mrb[1].mxu1  ;;  %v495_v11 = vpop.f32.mrb[0].mxu0 }
 0x10d   : > { %v557_v10 = vpop.f32.mrb[2].mxu1  ;;  %v1056_v14 = vpop.f32.mrb[1].mxu0  ;;  %v619_v17 = vpack.c.bf16 %v495_v11, %v495_v11 }
 0x10e   : > { %v626_v12 = vsel %vm621_vm2, %v620_v8, 0  ;;  %v1065_v13 = vpop.f32.mrb[3].mxu1  ;;  %v498_v15 = vpop.f32.mrb[2].mxu0 }
 0x10f   : > { %1075 = vmatpush3.bf16.xpose.msra.mxu1 %v626_v12  ;;  %v1057_v16 = vpop.f32.mrb[3].mxu0 }
 0x110   : > { %1086 = vmatprep.subr.bf16.mxu1 %v1357_v0 }
 0x114   : > { %v613_v31 = vpop.f32.mrb[4].mxu0 }
 0x115   : > { %v1072_v32 = vpop.f32.mrb[5].mxu0  ;;  %v681_v35 = vpack.c.bf16 %v613_v31, %v613_v31 }
 0x116   : > { %1077 = vmatmul.mubr.msk.bf16.vlgmr.msra.gmra.mrb[4].mxu1 %vm621_vm2, %v619_v17  ;;  %v616_v33 = vpop.f32.mrb[6].mxu0 }
 0x117   : > { %1088 = vmatprep.mubr.msk.bf16.mxu1 %vm1358_vm0, %v1357_v0  ;;  %v1073_v34 = vpop.f32.mrb[7].mxu0  ;;  %v687_v36 = vsel %vm685_vm3, %v681_v35, 0  ;;  %1087 = vmatpush3.bf16.msra.mxu1 %v735_v38 }
 0x118   : > { %1081 = vmatpush3.bf16.msra.mxu0 %v687_v36 }
 0x1e9   : > { %v662_v21 = vpop.f32.mrb[4].mxu1 }
 0x1ea   : > { %v1078_v22 = vpop.f32.mrb[5].mxu1  ;;  %v668_v23 = vsel %vm621_vm2, %v662_v21, -inf }
 0x1eb   : > { %669 = vmax.xlane.f32.xlu0 %v668_v23  ;;  %v665_v24 = vpop.f32.mrb[6].mxu1 }
 0x1ec   : > { %v1079_v25 = vpop.f32.mrb[7].mxu1 }
 0x278   : > { %v670_v26 = vpop.xlane.xlu0 %669 }
 0x279   : > { %v671_v27 = vsub.f32 %v662_v21, %v670_v26 }
 0x27b   : > { %v672_v28 = vmul.f32 1.442695, %v671_v27 }
 0x27d   : > { %1201 = vpow2.f32 %v672_v28 }
 0x287   : > { %v1202_v29 = vpop.eup %1201 }
 0x288   : > { %v674_v30 = vsel %vm621_vm2, %v1202_v29, 0.0 }
 0x289   : > { %675 = vadd.xlane.f32.xlu0 %v674_v30 }
 0x316   : > { %v676_v39 = vpop.xlane.xlu0 %675 }
 0x317   : > { %1203 = vrcp.f32 %v676_v39 }
 0x321   : > { %v1204_v40 = vpop.eup %1203 }
 0x322   : > { %v678_v41 = vmul.f32 %v1204_v40, %v1202_v29 }
 0x324   : > { %679 = vst.msk [vmem:[%s405_s16] sm:$0xff] %vm621_vm2, %v678_v41  ;;  %v680_v42 = vpack.c.bf16 %v678_v41, %v678_v41 }
 0x326   : > { %1083 = vmatmul.mubr.msk.bf16.vlgmr.msra.gmra.mrb[8].mxu0 %vm621_vm2, %v680_v42 }
 0x3f9   : > { %v723_v43 = vpop.f32.mrb[8].mxu0 }
 0x3fa   : > { %v729_v44 = vpack.c.bf16 %v723_v43, %v723_v43  ;;  %v1084_v45 = vpop.f32.mrb[9].mxu0 }
 0x3fb   : > { %v726_v46 = vpop.f32.mrb[10].mxu0 }
 0x3fc   : > { %v1085_v47 = vpop.f32.mrb[11].mxu0  ;;  %1089 = vmatmul.mubr.msk.bf16.vlgmr.msra.gmra.mrb[8].mxu1 %vm621_vm2, %v729_v44 }
 0x4cc   : > { %780 = sbr.rel (%p1024_p6) target bundleno = 1235 (0x4d3), region = 52 }
 0x4cf   : > { %v771_v48 = vpop.f32.mrb[8].mxu1 }
 0x4d0   : > { %v1090_v49 = vpop.f32.mrb[9].mxu1 }
 0x4d1   : > { %v774_v50 = vpop.f32.mrb[10].mxu1 }
 0x4d2   : > { %v1091_v51 = vpop.f32.mrb[11].mxu1 }
 0x4d3 PF: > { %v782_v53 = vld [vmem:[%s398_s23] sm:$0xff]  ;;  %s1027_s14 = sshll.u32 %s1343_s12, 7  ;;  %s804_s21 = sshll.u32 %s398_s23, 4  ;;  %s1599_s21 = int_to_ptr.vmem [resolvable:$true] %s804_s21 }
 0x4d4   : > { %v783_v54 = vadd.f32 %v782_v53, %v771_v48  ;;  %s1597_s3 = scalar_lea.hbm %s1702_s7, %s1027_s14  ;;  %s1028_s10 = sshll.u32 %s1343_s12, 2 }
 0x4d5   : > { %s1603_s13 = sshll.u32 %s405_s16, 4  ;;  %s1733_s8 = sand.u32 1, %s1331_s9   ;;  %s1632_s13 = int_to_ptr.vmem [resolvable:$true] %s1603_s13 }
 0x4d6   : > { %784 = vst.msk [vmem:[%s398_s23] sm:$0xff] %vm457_vm1, %v783_v54  ;;  %s786_s29 = scalar_lea.sflag [#allocation3], %s1733_s8  ;;  %s1205_s18 = scalar_lea.vmem %s1599_s21, 128 }
 0x4d7   : > { %p1206_p8 = scmp.ne.s32.totalorder %s1599_s21, %s1205_s18  ;;  %s1360_s20 = smov [#allocation2]  }
 0x4d8   : > { %s1209_s25 = sshll.u32 %s1360_s20, 4  ;;  %s1210_s25 = int_to_ptr.vmem [resolvable:$false] %s1209_s25 }
 0x4d9   : > { %p1207_p9 = pnand %p1206_p8, %p1478_p3  ;;  %s1211_s14 = scalar_lea.vmem %s1210_s25, 256 }
 0x4da   : > { %p1212_p11 = scmp.lt.s32.totalorder %s1599_s21, %s1210_s25  ;;  %p1213_p0 = scmp.lt.s32.totalorder %s1211_s14, %s1205_s18 }
 0x4db   : > { %p1208_p10 = pneg %p1207_p9 }
 0x4dc   : > { %p1214_p1 = por %p1213_p0, %p1212_p11 }
 0x4de   : > { %p1215_p4 = pnand %p1214_p1, %p1208_p10 }
 0x4e0   : > { %1218 = shalt.err (!%p1215_p4)
}
 0x4e1   : > { %s1219_s16 = scalar_lea.hbm %s1597_s3, 128  ;;  %s1223_s17 = scalar_lea.hbm %s1702_s7, 256 }
 0x4e2   : > { %p1220_p2 = scmp.ne.s32.totalorder %s1597_s3, %s1219_s16  ;;  %p1224_p8 = scmp.lt.u32.totalorder %s1597_s3, %s1702_s7 }
 0x4e3   : > { %p1225_p9 = scmp.lt.u32.totalorder %s1223_s17, %s1219_s16  ;;  %p1227_p11 = scmp.lt.u32.totalorder %s1219_s16, %s1597_s3 }
 0x4e4   : > { %p1221_p5 = pnand %p1220_p2, %p1478_p3 }
 0x4e5   : > { %p1226_p10 = por %p1225_p9, %p1224_p8 }
 0x4e6   : > { %p1222_p6 = pneg %p1221_p5 }
 0x4e7   : > { %p1228_p0 = por %p1227_p11, %p1226_p10 }
 0x4e9   : > { %p1229_p1 = pnand %p1228_p0, %p1222_p6 }
 0x4eb   : > { %1232 = shalt.err (!%p1229_p1)
}
 0x4ec   : > { %1092 = dma.vmem_to_hbm [thread:$0]  (%p1478_p3), %s1599_s21, 128, %s1597_s3, %s786_s29  }
 0x4ed   : > { %s815_s18 = sadd.s32 %s1339_s11, %s1028_s10  ;;  %s1734_s23 = sld [smem:[#allocation19_spill]] }
 0x4ee   : > { %s1029_s25 = sshll.u32 %s815_s18, 7  ;;  %s791_s19 = scalar_lea.sflag [#allocation5], %s403_s24 }
 0x4ef   : > { %s1233_s17 = scalar_lea.vmem %s1632_s13, 128  ;;  %s1361_s3 = smov [#allocation4]  }
 0x4f0   : > { %p1234_p4 = scmp.ne.s32.totalorder %s1632_s13, %s1233_s17  ;;  %s1237_s12 = sshll.u32 %s1361_s3, 4  ;;  %s1238_s12 = int_to_ptr.vmem [resolvable:$false] %s1237_s12 }
 0x4f1   : > { %s1239_s11 = scalar_lea.vmem %s1238_s12, 256  ;;  %p1240_p3 = scmp.lt.s32.totalorder %s1632_s13, %s1238_s12 }
 0x4f2   : > { %p1235_p2 = pnand %p1234_p4, %p1507_p12  ;;  %p1241_p6 = scmp.lt.s32.totalorder %s1239_s11, %s1233_s17 }
 0x4f3   : > { %s817_s22 = scalar_lea.hbm %s1734_s23, %s1029_s25 }
 0x4f4   : > { %p1236_p5 = pneg %p1235_p2  ;;  %p1242_p8 = por %p1241_p6, %p1240_p3 }
 0x4f6   : > { %p1243_p9 = pnand %p1242_p8, %p1236_p5 }
 0x4f8   : > { %1246 = shalt.err (!%p1243_p9)
}
 0x4f9   : > { %s1247_s21 = scalar_lea.hbm %s817_s22, 128  ;;  %s1251_s29 = scalar_lea.hbm %s1734_s23, 1024 }
 0x4fa   : > { %p1248_p10 = scmp.ne.s32.totalorder %s817_s22, %s1247_s21  ;;  %p1252_p1 = scmp.lt.u32.totalorder %s817_s22, %s1734_s23 }
 0x4fb   : > { %p1253_p4 = scmp.lt.u32.totalorder %s1251_s29, %s1247_s21  ;;  %p1255_p13 = scmp.lt.u32.totalorder %s1247_s21, %s817_s22 }
 0x4fc   : > { %p1249_p11 = pnand %p1248_p10, %p1507_p12 }
 0x4fd   : > { %p1254_p2 = por %p1253_p4, %p1252_p1 }
 0x4fe   : > { %p1250_p0 = pneg %p1249_p11 }
 0x4ff   : > { %p1256_p3 = por %p1255_p13, %p1254_p2 }
 0x501   : > { %p1257_p5 = pnand %p1256_p3, %p1250_p0 }
 0x503   : > { %1260 = shalt.err (!%p1257_p5)
}
 0x504   : > { %1093 = dma.vmem_to_hbm [thread:$0]  (%p1507_p12), %s1632_s13, 128, %s817_s22, %s791_s19  }
 0x505 PF: > { %s1735_s18 = sld [smem:[#allocation9_spill]]  ;;  %p1103_p6 = scmp.ge.s32.totalorder %s1355_s15, 2 }
 0x507   : > { %p1097_p8 = pnand %p1103_p6, %p1495_p7 }
 0x50b   : > { %s831_s25 = sand.u32 1, %s1735_s18  }
 0x50c   : > { %s832_s14 = scalar_lea.sflag [#allocation3], %s831_s25 }
 0x50d   : > { %1306 = dma.done.wait (!%p1097_p8), %s832_s14, 128  }
 0x50e   : > { %1308 = vsyncadd (!%p1097_p8), %s832_s14, 4294967168  ;;  %s1736_s16 = sld [smem:[#allocation17_spill]]  ;;  %s840_s17 = sand.u32 1, %s1315_s27  }
 0x50f   : > { %s841_s3 = scalar_lea.sflag [#allocation5], %s840_s17 }
 0x514   : > { %p1737_p13 = scmp.ne.s32.totalorder %s1736_s16, 0 }
 0x516   : > { %p1100_p9 = pnand %p1103_p6, %p1737_p13 }
 0x518   : > { %1310 = dma.done.wait (!%p1100_p9), %s841_s3, 128  }
 0x519   : > { %1312 = vsyncadd (!%p1100_p9), %s841_s3, 4294967168  ;;  %s25_s15 = sadd.s32 1, %s1355_s15   ;;  %s1738_s30 = sld [smem:[#allocation8_spill]] }
 0x51a   : > { %p22_p12 = scmp.ge.s32.totalorder %s25_s15, 10   ;;  %s1739_s29 = sld [smem:[#allocation16_spill]] }
 0x51b   : > { %s1740_s26 = sld [smem:[#allocation10_spill]]  ;;  %s1741_s10 = sld [smem:[#allocation15_spill]] }
 0x51c   : > { %s1742_s11 = sld [smem:[#allocation11_spill]]  ;;  %s1743_s12 = sld [smem:[#allocation12_spill]] }
 0x51d   : > { %s1744_s13 = sld [smem:[#allocation13_spill]]  ;;  %s1745_s14 = sld [smem:[#allocation14_spill]] }
 0x51e   : > { %s1746_s27 = smov %s1319_s28  ;;  %24 = sbr.rel (!%p22_p12) target bundleno = 12 (0xc), region = 122 }
 0x51f   : > { %s1747_s28 = smov %s1738_s30  ;;  %s1748_s30 = smov %s1331_s9 }
 0x521   : > { %s1749_s9 = smov %s1740_s26 }
 0x525   :  { %846 = vsyncpa [#allocation3], 1 }
 0x526   :  { %848 = vsyncpa [#allocation3 + $0x1], 1 }
 0x527   :  { %849 = vsyncpa [#allocation5], 1 }
 0x528   :  { %851 = vsyncpa [#allocation5 + $0x1], 1 }

</bundles_post_ra>
